<compile_context>
chip_gen: v7x
topology: tpu7x:2x2x1
jax: 0.10.0
libtpu: 0.0.40
codegen_flags: <defaults>
</compile_context>

<pallas_src>
import jax
import jax.numpy as jnp
from jax.experimental import pallas as pl
from jax.experimental.pallas import tpu as pltpu


def trd_gru_kernel(x_ref, wih_ref, bih_ref, whh_ref, bhh_ref, out_ref, gi_ref):
    """Single pallas_call invocation (no grid).

    x_ref  : (T*B, E)   time-major flattened input (row t*B + b).
    wih_ref: (E, 3H)    input weights, pre-transposed, gate order (r, z, n).
    bih_ref: (1, 3H)    input bias.
    whh_ref: (H, 3H)    recurrent weights, pre-transposed and gate-fused so the
                        recurrence needs ONE dot per step instead of three.
    bhh_ref: (1, 3H)    recurrent bias (adding it to gh before the gate split
                        keeps b_hn correctly inside r * (W_hn h + b_hn)).
    out_ref: (B, H)     sum over directions of the final hidden states.
    gi_ref : (T, B, 3H) VMEM scratch holding the hoisted input projection.
    """
    T, B, _ = gi_ref.shape
    H = whh_ref.shape[0]

    # ---- Preamble: hoisted, time-independent input projection --------------
    # ONE GEMM over all T*B rows, fused into this kernel (at these shapes the
    # wall clock is dominated by launches / HBM round-trips, not FLOPs).
    gi_flat = (jnp.dot(x_ref[...], wih_ref[...],
                       preferred_element_type=jnp.float32) + bih_ref[...])
    # Scatter the time-major row blocks into the (T, B, 3H) scratch with
    # static slices/stores (avoids an in-kernel (T*B,3H)->(T,B,3H) relayout).
    for t in range(T):
        gi_ref[t] = gi_flat[t * B:(t + 1) * B, :]

    # ---- Recurrence: both directions fused on the batch axis ---------------
    # rows [0:B] = forward pass (reads gi[t]); rows [B:2B] = reversed pass
    # (reads gi[T-1-t]).  The reversed stream is never materialized.
    def step(t, h):
        gi_t = jnp.concatenate([gi_ref[t], gi_ref[T - 1 - t]], axis=0)   # (2B, 3H)
        # Read recurrent weights/bias from VMEM inside the loop (vld co-issues
        # with the MXU slot) instead of pinning them in vregs (matters H>=128).
        gh = (jnp.dot(h, whh_ref[...],
                      preferred_element_type=jnp.float32) + bhh_ref[...])  # (2B, 3H)
        rz = jax.nn.sigmoid(gi_t[:, :2 * H] + gh[:, :2 * H])
        r = rz[:, :H]
        z = rz[:, H:]
        n = jnp.tanh(gi_t[:, 2 * H:] + r * gh[:, 2 * H:])
        return (1.0 - z) * n + z * h

    h0 = jnp.zeros((2 * B, H), jnp.float32)
    # Capped unroll (not full) keeps instruction memory / vreg live ranges
    # bounded while still giving the scheduler a window.
    h = jax.lax.fori_loop(0, T, step, h0, unroll=min(T, 8))

    # TODO(synk): for long sequences, chunk T on an "arbitrary" grid axis with
    # h carried in VMEM scratch; on v7x put the two directions on a size-2
    # "parallel" axis (one per TensorCore) instead of batch-fusing them.
    out_ref[...] = h[:B, :] + h[B:, :]


def trd_encoder_forward(x_bte, w_ih, w_hh, b_ih, b_hh):
    """x_bte: (B, T, E) batch_first input.  w_ih: (3H, E), w_hh: (3H, H),
    b_ih/b_hh: (3H,) -- PyTorch GRU parameters with gate order (r, z, n).
    Returns (B, 1, H) == f_out + r_out (summed final hidden states)."""
    B, T, E = x_bte.shape
    H = w_hh.shape[1]
    f32 = jnp.float32

    # Tiny layout prep (a few KiB of XLA work): time-major flatten of x and
    # pre-transposed, gate-fused weights so the kernel dots need no transposes.
    x_tb = jnp.transpose(x_bte.astype(f32), (1, 0, 2)).reshape(T * B, E)
    wih_t = w_ih.astype(f32).T                        # (E, 3H)
    whh_t = w_hh.astype(f32).T                        # (H, 3H)  gate-fused
    bih = b_ih.astype(f32).reshape(1, 3 * H)
    bhh = b_hh.astype(f32).reshape(1, 3 * H)

    # Explicit VMEM budget sized from the (8,128)-padded resident footprint.
    def _padded_bytes(shape):
        shape = (1,) * (2 - len(shape)) + tuple(shape)
        lead = 1
        for d in shape[:-2]:
            lead *= d
        sub = -(-shape[-2] // 8) * 8
        lane = -(-shape[-1] // 128) * 128
        return lead * sub * lane * 4

    resident = sum(_padded_bytes(s) for s in
                   [(T * B, E), (E, 3 * H), (H, 3 * H), (1, 3 * H), (1, 3 * H),
                    (B, H), (T, B, 3 * H)])
    vmem_limit = int(min(96 * 2**20, max(16 * 2**20, 4 * resident)))

    out = pl.pallas_call(
        trd_gru_kernel,
        out_shape=jax.ShapeDtypeStruct((B, H), f32),
        # Single invocation (no grid): all operands stay VMEM-resident for the
        # whole recurrence -> zero per-timestep pipeline/DMA overhead.
        scratch_shapes=[pltpu.VMEM((T, B, 3 * H), f32)],
        compiler_params=pltpu.CompilerParams(vmem_limit_bytes=vmem_limit),
    )(x_tb, wih_t, bih, whh_t, bhh)

    # PyTorch: h_n is (1, B, H); transpose(0,1) -> (B, 1, H); directions summed.
    return out.reshape(B, 1, H)


def _gru_reference(x_bte, w_ih, w_hh, b_ih, b_hh):
    """Pure-JAX reference matching the PyTorch module's forward."""
    B, T, E = x_bte.shape
    H = w_hh.shape[1]
    hp = jax.lax.Precision.HIGHEST

    def cell(h, x_t):
        gi = jnp.dot(x_t, w_ih.T, precision=hp) + b_ih
        gh = jnp.dot(h, w_hh.T, precision=hp) + b_hh
        r = jax.nn.sigmoid(gi[:, :H] + gh[:, :H])
        z = jax.nn.sigmoid(gi[:, H:2 * H] + gh[:, H:2 * H])
        n = jnp.tanh(gi[:, 2 * H:] + r * gh[:, 2 * H:])
        return (1.0 - z) * n + z * h, None

    def run(x):
        h0 = jnp.zeros((B, H), jnp.float32)
        h_fin, _ = jax.lax.scan(cell, h0, jnp.transpose(x, (1, 0, 2)))
        return h_fin

    f = run(x_bte)
    r = run(jnp.flip(x_bte, axis=1))
    return (f + r).reshape(B, 1, H)


if __name__ == "__main__":
    # Small shapes consistent with the module: batch=2, seq=8, emb_dim=out_dim=32.
    B, T, E = 2, 8, 32
    H = E  # out_dim defaults to emb_dim

    key = jax.random.PRNGKey(0)
    k_x, k_wi, k_wh, k_bi, k_bh = jax.random.split(key, 5)

    bound = 1.0 / (H ** 0.5)  # PyTorch GRU default init: U(-1/sqrt(H), 1/sqrt(H))
    x = jax.random.normal(k_x, (B, T, E), dtype=jnp.float32)
    w_ih = jax.random.uniform(k_wi, (3 * H, E), jnp.float32, -bound, bound)
    w_hh = jax.random.uniform(k_wh, (3 * H, H), jnp.float32, -bound, bound)
    b_ih = jax.random.uniform(k_bi, (3 * H,), jnp.float32, -bound, bound)
    b_hh = jax.random.uniform(k_bh, (3 * H,), jnp.float32, -bound, bound)

    fwd = jax.jit(trd_encoder_forward)
    out = fwd(x, w_ih, w_hh, b_ih, b_hh)
    out = jax.block_until_ready(out)

    ref = _gru_reference(x, w_ih, w_hh, b_ih, b_hh)
    assert out.shape == (B, 1, H), f"bad shape {out.shape}"
    assert jnp.allclose(out, ref, atol=1e-4, rtol=1e-4), (
        f"mismatch vs JAX reference, max err {jnp.max(jnp.abs(out - ref))}")

    print("KERNEL_OK")
</pallas_src>

<mosaic_0001>
module attributes {stable_mosaic.version = 11 : i64} {
  func.func @trd_gru_kernel(%arg0: memref<16x32xf32, #tpu.memory_space<vmem>>, %arg1: memref<32x96xf32, #tpu.memory_space<vmem>>, %arg2: memref<1x96xf32, #tpu.memory_space<vmem>>, %arg3: memref<32x96xf32, #tpu.memory_space<vmem>>, %arg4: memref<1x96xf32, #tpu.memory_space<vmem>>, %arg5: memref<2x32xf32, #tpu.memory_space<vmem>>, %arg6: memref<8x2x96xf32, #tpu.memory_space<vmem>>) attributes {dimension_semantics = [], scalar_prefetch = 0 : i64, scratch_operands = 1 : i64, tpu.core_type = #tpu.core_type<tc>} {
    %c0 = arith.constant 0 : index
    %c0_0 = arith.constant 0 : index
    %0 = vector.load %arg0[%c0, %c0_0] : memref<16x32xf32, #tpu.memory_space<vmem>>, vector<16x32xf32>
    %c0_1 = arith.constant 0 : index
    %c0_2 = arith.constant 0 : index
    %1 = vector.load %arg1[%c0_1, %c0_2] : memref<32x96xf32, #tpu.memory_space<vmem>>, vector<32x96xf32>
    %cst = arith.constant dense<0.000000e+00> : vector<16x96xf32>
    %2 = tpu.matmul %0, %1, %cst {dimension_numbers = #tpu.dot_dimension_numbers<[1], [0], [0], [1], [0, 0, 1, 1], [], []>} : vector<16x32xf32>, vector<32x96xf32>, vector<16x96xf32> -> vector<16x96xf32>
    %c0_3 = arith.constant 0 : index
    %c0_4 = arith.constant 0 : index
    %3 = vector.load %arg2[%c0_3, %c0_4] : memref<1x96xf32, #tpu.memory_space<vmem>>, vector<1x96xf32>
    %4 = vector.broadcast %3 : vector<1x96xf32> to vector<16x96xf32>
    %5 = arith.addf %2, %4 : vector<16x96xf32>
    %6 = vector.extract_strided_slice %5 {offsets = [0, 0], sizes = [2, 96], strides = [1, 1]} : vector<16x96xf32> to vector<2x96xf32>
    %c0_5 = arith.constant 0 : index
    %c0_6 = arith.constant 0 : index
    %c0_7 = arith.constant 0 : index
    %7 = vector.load %arg6[%c0_5, %c0_6, %c0_7] : memref<8x2x96xf32, #tpu.memory_space<vmem>>, vector<1x2x96xf32>
    %8 = vector.shape_cast %7 : vector<1x2x96xf32> to vector<2x96xf32>
    %9 = vector.shape_cast %6 : vector<2x96xf32> to vector<1x2x96xf32>
    tpu.vector_store %arg6[%c0_5, %c0_6, %c0_7], %9 {strides = array<i32>} : memref<8x2x96xf32, #tpu.memory_space<vmem>>, vector<1x2x96xf32>,
    %10 = vector.extract_strided_slice %5 {offsets = [2, 0], sizes = [2, 96], strides = [1, 1]} : vector<16x96xf32> to vector<2x96xf32>
    %c1 = arith.constant 1 : index
    %c0_8 = arith.constant 0 : index
    %c0_9 = arith.constant 0 : index
    %11 = vector.load %arg6[%c1, %c0_8, %c0_9] : memref<8x2x96xf32, #tpu.memory_space<vmem>>, vector<1x2x96xf32>
    %12 = vector.shape_cast %11 : vector<1x2x96xf32> to vector<2x96xf32>
    %13 = vector.shape_cast %10 : vector<2x96xf32> to vector<1x2x96xf32>
    tpu.vector_store %arg6[%c1, %c0_8, %c0_9], %13 {strides = array<i32>} : memref<8x2x96xf32, #tpu.memory_space<vmem>>, vector<1x2x96xf32>,
    %14 = vector.extract_strided_slice %5 {offsets = [4, 0], sizes = [2, 96], strides = [1, 1]} : vector<16x96xf32> to vector<2x96xf32>
    %c2 = arith.constant 2 : index
    %c0_10 = arith.constant 0 : index
    %c0_11 = arith.constant 0 : index
    %15 = vector.load %arg6[%c2, %c0_10, %c0_11] : memref<8x2x96xf32, #tpu.memory_space<vmem>>, vector<1x2x96xf32>
    %16 = vector.shape_cast %15 : vector<1x2x96xf32> to vector<2x96xf32>
    %17 = vector.shape_cast %14 : vector<2x96xf32> to vector<1x2x96xf32>
    tpu.vector_store %arg6[%c2, %c0_10, %c0_11], %17 {strides = array<i32>} : memref<8x2x96xf32, #tpu.memory_space<vmem>>, vector<1x2x96xf32>,
    %18 = vector.extract_strided_slice %5 {offsets = [6, 0], sizes = [2, 96], strides = [1, 1]} : vector<16x96xf32> to vector<2x96xf32>
    %c3 = arith.constant 3 : index
    %c0_12 = arith.constant 0 : index
    %c0_13 = arith.constant 0 : index
    %19 = vector.load %arg6[%c3, %c0_12, %c0_13] : memref<8x2x96xf32, #tpu.memory_space<vmem>>, vector<1x2x96xf32>
    %20 = vector.shape_cast %19 : vector<1x2x96xf32> to vector<2x96xf32>
    %21 = vector.shape_cast %18 : vector<2x96xf32> to vector<1x2x96xf32>
    tpu.vector_store %arg6[%c3, %c0_12, %c0_13], %21 {strides = array<i32>} : memref<8x2x96xf32, #tpu.memory_space<vmem>>, vector<1x2x96xf32>,
    %22 = vector.extract_strided_slice %5 {offsets = [8, 0], sizes = [2, 96], strides = [1, 1]} : vector<16x96xf32> to vector<2x96xf32>
    %c4 = arith.constant 4 : index
    %c0_14 = arith.constant 0 : index
    %c0_15 = arith.constant 0 : index
    %23 = vector.load %arg6[%c4, %c0_14, %c0_15] : memref<8x2x96xf32, #tpu.memory_space<vmem>>, vector<1x2x96xf32>
    %24 = vector.shape_cast %23 : vector<1x2x96xf32> to vector<2x96xf32>
    %25 = vector.shape_cast %22 : vector<2x96xf32> to vector<1x2x96xf32>
    tpu.vector_store %arg6[%c4, %c0_14, %c0_15], %25 {strides = array<i32>} : memref<8x2x96xf32, #tpu.memory_space<vmem>>, vector<1x2x96xf32>,
    %26 = vector.extract_strided_slice %5 {offsets = [10, 0], sizes = [2, 96], strides = [1, 1]} : vector<16x96xf32> to vector<2x96xf32>
    %c5 = arith.constant 5 : index
    %c0_16 = arith.constant 0 : index
    %c0_17 = arith.constant 0 : index
    %27 = vector.load %arg6[%c5, %c0_16, %c0_17] : memref<8x2x96xf32, #tpu.memory_space<vmem>>, vector<1x2x96xf32>
    %28 = vector.shape_cast %27 : vector<1x2x96xf32> to vector<2x96xf32>
    %29 = vector.shape_cast %26 : vector<2x96xf32> to vector<1x2x96xf32>
    tpu.vector_store %arg6[%c5, %c0_16, %c0_17], %29 {strides = array<i32>} : memref<8x2x96xf32, #tpu.memory_space<vmem>>, vector<1x2x96xf32>,
    %30 = vector.extract_strided_slice %5 {offsets = [12, 0], sizes = [2, 96], strides = [1, 1]} : vector<16x96xf32> to vector<2x96xf32>
    %c6 = arith.constant 6 : index
    %c0_18 = arith.constant 0 : index
    %c0_19 = arith.constant 0 : index
    %31 = vector.load %arg6[%c6, %c0_18, %c0_19] : memref<8x2x96xf32, #tpu.memory_space<vmem>>, vector<1x2x96xf32>
    %32 = vector.shape_cast %31 : vector<1x2x96xf32> to vector<2x96xf32>
    %33 = vector.shape_cast %30 : vector<2x96xf32> to vector<1x2x96xf32>
    tpu.vector_store %arg6[%c6, %c0_18, %c0_19], %33 {strides = array<i32>} : memref<8x2x96xf32, #tpu.memory_space<vmem>>, vector<1x2x96xf32>,
    %34 = vector.extract_strided_slice %5 {offsets = [14, 0], sizes = [2, 96], strides = [1, 1]} : vector<16x96xf32> to vector<2x96xf32>
    %c7 = arith.constant 7 : index
    %c0_20 = arith.constant 0 : index
    %c0_21 = arith.constant 0 : index
    %35 = vector.load %arg6[%c7, %c0_20, %c0_21] : memref<8x2x96xf32, #tpu.memory_space<vmem>>, vector<1x2x96xf32>
    %36 = vector.shape_cast %35 : vector<1x2x96xf32> to vector<2x96xf32>
    %37 = vector.shape_cast %34 : vector<2x96xf32> to vector<1x2x96xf32>
    tpu.vector_store %arg6[%c7, %c0_20, %c0_21], %37 {strides = array<i32>} : memref<8x2x96xf32, #tpu.memory_space<vmem>>, vector<1x2x96xf32>,
    %cst_22 = arith.constant 0.000000e+00 : f32
    %38 = vector.broadcast %cst_22 : f32 to vector<4x32xf32>
    %c0_i32 = arith.constant 0 : i32
    %39 = arith.index_cast %c0_i32 : i32 to index
    %c0_23 = arith.constant 0 : index
    %c0_24 = arith.constant 0 : index
    %40 = vector.load %arg6[%39, %c0_23, %c0_24] : memref<8x2x96xf32, #tpu.memory_space<vmem>>, vector<1x2x96xf32>
    %41 = vector.shape_cast %40 : vector<1x2x96xf32> to vector<2x96xf32>
    %c7_i32 = arith.constant 7 : i32
    %42 = arith.subi %c7_i32, %c0_i32 : i32
    %43 = arith.index_cast %42 : i32 to index
    %c0_25 = arith.constant 0 : index
    %c0_26 = arith.constant 0 : index
    %44 = vector.load %arg6[%43, %c0_25, %c0_26] : memref<8x2x96xf32, #tpu.memory_space<vmem>>, vector<1x2x96xf32>
    %45 = vector.shape_cast %44 : vector<1x2x96xf32> to vector<2x96xf32>
    %46 = tpu.concatenate %41, %45 in 0 : vector<2x96xf32>, vector<2x96xf32> -> vector<4x96xf32>
    %c0_27 = arith.constant 0 : index
    %c0_28 = arith.constant 0 : index
    %47 = vector.load %arg3[%c0_27, %c0_28] : memref<32x96xf32, #tpu.memory_space<vmem>>, vector<32x96xf32>
    %cst_29 = arith.constant dense<0.000000e+00> : vector<4x96xf32>
    %48 = tpu.matmul %38, %47, %cst_29 {dimension_numbers = #tpu.dot_dimension_numbers<[1], [0], [0], [1], [0, 0, 1, 1], [], []>} : vector<4x32xf32>, vector<32x96xf32>, vector<4x96xf32> -> vector<4x96xf32>
    %c0_30 = arith.constant 0 : index
    %c0_31 = arith.constant 0 : index
    %49 = vector.load %arg4[%c0_30, %c0_31] : memref<1x96xf32, #tpu.memory_space<vmem>>, vector<1x96xf32>
    %50 = vector.broadcast %49 : vector<1x96xf32> to vector<4x96xf32>
    %51 = arith.addf %48, %50 : vector<4x96xf32>
    %52 = vector.extract_strided_slice %46 {offsets = [0, 0], sizes = [4, 64], strides = [1, 1]} : vector<4x96xf32> to vector<4x64xf32>
    %53 = vector.extract_strided_slice %51 {offsets = [0, 0], sizes = [4, 64], strides = [1, 1]} : vector<4x96xf32> to vector<4x64xf32>
    %54 = arith.addf %52, %53 : vector<4x64xf32>
    %55 = arith.negf %54 : vector<4x64xf32>
    %56 = math.exp %55 : vector<4x64xf32>
    %cst_32 = arith.constant 1.000000e+00 : f32
    %57 = vector.broadcast %cst_32 : f32 to vector<4x64xf32>
    %58 = arith.addf %57, %56 : vector<4x64xf32>
    %59 = arith.divf %57, %58 : vector<4x64xf32>
    %60 = vector.extract_strided_slice %59 {offsets = [0, 0], sizes = [4, 32], strides = [1, 1]} : vector<4x64xf32> to vector<4x32xf32>
    %61 = vector.extract_strided_slice %59 {offsets = [0, 32], sizes = [4, 32], strides = [1, 1]} : vector<4x64xf32> to vector<4x32xf32>
    %62 = vector.extract_strided_slice %46 {offsets = [0, 64], sizes = [4, 32], strides = [1, 1]} : vector<4x96xf32> to vector<4x32xf32>
    %63 = vector.extract_strided_slice %51 {offsets = [0, 64], sizes = [4, 32], strides = [1, 1]} : vector<4x96xf32> to vector<4x32xf32>
    %64 = arith.mulf %60, %63 : vector<4x32xf32>
    %65 = arith.addf %62, %64 : vector<4x32xf32>
    %66 = math.tanh %65 : vector<4x32xf32>
    %cst_33 = arith.constant 1.000000e+00 : f32
    %67 = vector.broadcast %cst_33 : f32 to vector<4x32xf32>
    %68 = arith.subf %67, %61 : vector<4x32xf32>
    %69 = arith.mulf %68, %66 : vector<4x32xf32>
    %70 = arith.mulf %61, %38 : vector<4x32xf32>
    %71 = arith.addf %69, %70 : vector<4x32xf32>
    %c1_i32 = arith.constant 1 : i32
    %72 = arith.index_cast %c1_i32 : i32 to index
    %c0_34 = arith.constant 0 : index
    %c0_35 = arith.constant 0 : index
    %73 = vector.load %arg6[%72, %c0_34, %c0_35] : memref<8x2x96xf32, #tpu.memory_space<vmem>>, vector<1x2x96xf32>
    %74 = vector.shape_cast %73 : vector<1x2x96xf32> to vector<2x96xf32>
    %c7_i32_36 = arith.constant 7 : i32
    %75 = arith.subi %c7_i32_36, %c1_i32 : i32
    %76 = arith.index_cast %75 : i32 to index
    %c0_37 = arith.constant 0 : index
    %c0_38 = arith.constant 0 : index
    %77 = vector.load %arg6[%76, %c0_37, %c0_38] : memref<8x2x96xf32, #tpu.memory_space<vmem>>, vector<1x2x96xf32>
    %78 = vector.shape_cast %77 : vector<1x2x96xf32> to vector<2x96xf32>
    %79 = tpu.concatenate %74, %78 in 0 : vector<2x96xf32>, vector<2x96xf32> -> vector<4x96xf32>
    %c0_39 = arith.constant 0 : index
    %c0_40 = arith.constant 0 : index
    %80 = vector.load %arg3[%c0_39, %c0_40] : memref<32x96xf32, #tpu.memory_space<vmem>>, vector<32x96xf32>
    %cst_41 = arith.constant dense<0.000000e+00> : vector<4x96xf32>
    %81 = tpu.matmul %71, %80, %cst_41 {dimension_numbers = #tpu.dot_dimension_numbers<[1], [0], [0], [1], [0, 0, 1, 1], [], []>} : vector<4x32xf32>, vector<32x96xf32>, vector<4x96xf32> -> vector<4x96xf32>
    %c0_42 = arith.constant 0 : index
    %c0_43 = arith.constant 0 : index
    %82 = vector.load %arg4[%c0_42, %c0_43] : memref<1x96xf32, #tpu.memory_space<vmem>>, vector<1x96xf32>
    %83 = vector.broadcast %82 : vector<1x96xf32> to vector<4x96xf32>
    %84 = arith.addf %81, %83 : vector<4x96xf32>
    %85 = vector.extract_strided_slice %79 {offsets = [0, 0], sizes = [4, 64], strides = [1, 1]} : vector<4x96xf32> to vector<4x64xf32>
    %86 = vector.extract_strided_slice %84 {offsets = [0, 0], sizes = [4, 64], strides = [1, 1]} : vector<4x96xf32> to vector<4x64xf32>
    %87 = arith.addf %85, %86 : vector<4x64xf32>
    %88 = arith.negf %87 : vector<4x64xf32>
    %89 = math.exp %88 : vector<4x64xf32>
    %cst_44 = arith.constant 1.000000e+00 : f32
    %90 = vector.broadcast %cst_44 : f32 to vector<4x64xf32>
    %91 = arith.addf %90, %89 : vector<4x64xf32>
    %92 = arith.divf %90, %91 : vector<4x64xf32>
    %93 = vector.extract_strided_slice %92 {offsets = [0, 0], sizes = [4, 32], strides = [1, 1]} : vector<4x64xf32> to vector<4x32xf32>
    %94 = vector.extract_strided_slice %92 {offsets = [0, 32], sizes = [4, 32], strides = [1, 1]} : vector<4x64xf32> to vector<4x32xf32>
    %95 = vector.extract_strided_slice %79 {offsets = [0, 64], sizes = [4, 32], strides = [1, 1]} : vector<4x96xf32> to vector<4x32xf32>
    %96 = vector.extract_strided_slice %84 {offsets = [0, 64], sizes = [4, 32], strides = [1, 1]} : vector<4x96xf32> to vector<4x32xf32>
    %97 = arith.mulf %93, %96 : vector<4x32xf32>
    %98 = arith.addf %95, %97 : vector<4x32xf32>
    %99 = math.tanh %98 : vector<4x32xf32>
    %cst_45 = arith.constant 1.000000e+00 : f32
    %100 = vector.broadcast %cst_45 : f32 to vector<4x32xf32>
    %101 = arith.subf %100, %94 : vector<4x32xf32>
    %102 = arith.mulf %101, %99 : vector<4x32xf32>
    %103 = arith.mulf %94, %71 : vector<4x32xf32>
    %104 = arith.addf %102, %103 : vector<4x32xf32>
    %c2_i32 = arith.constant 2 : i32
    %105 = arith.index_cast %c2_i32 : i32 to index
    %c0_46 = arith.constant 0 : index
    %c0_47 = arith.constant 0 : index
    %106 = vector.load %arg6[%105, %c0_46, %c0_47] : memref<8x2x96xf32, #tpu.memory_space<vmem>>, vector<1x2x96xf32>
    %107 = vector.shape_cast %106 : vector<1x2x96xf32> to vector<2x96xf32>
    %c7_i32_48 = arith.constant 7 : i32
    %108 = arith.subi %c7_i32_48, %c2_i32 : i32
    %109 = arith.index_cast %108 : i32 to index
    %c0_49 = arith.constant 0 : index
    %c0_50 = arith.constant 0 : index
    %110 = vector.load %arg6[%109, %c0_49, %c0_50] : memref<8x2x96xf32, #tpu.memory_space<vmem>>, vector<1x2x96xf32>
    %111 = vector.shape_cast %110 : vector<1x2x96xf32> to vector<2x96xf32>
    %112 = tpu.concatenate %107, %111 in 0 : vector<2x96xf32>, vector<2x96xf32> -> vector<4x96xf32>
    %c0_51 = arith.constant 0 : index
    %c0_52 = arith.constant 0 : index
    %113 = vector.load %arg3[%c0_51, %c0_52] : memref<32x96xf32, #tpu.memory_space<vmem>>, vector<32x96xf32>
    %cst_53 = arith.constant dense<0.000000e+00> : vector<4x96xf32>
    %114 = tpu.matmul %104, %113, %cst_53 {dimension_numbers = #tpu.dot_dimension_numbers<[1], [0], [0], [1], [0, 0, 1, 1], [], []>} : vector<4x32xf32>, vector<32x96xf32>, vector<4x96xf32> -> vector<4x96xf32>
    %c0_54 = arith.constant 0 : index
    %c0_55 = arith.constant 0 : index
    %115 = vector.load %arg4[%c0_54, %c0_55] : memref<1x96xf32, #tpu.memory_space<vmem>>, vector<1x96xf32>
    %116 = vector.broadcast %115 : vector<1x96xf32> to vector<4x96xf32>
    %117 = arith.addf %114, %116 : vector<4x96xf32>
    %118 = vector.extract_strided_slice %112 {offsets = [0, 0], sizes = [4, 64], strides = [1, 1]} : vector<4x96xf32> to vector<4x64xf32>
    %119 = vector.extract_strided_slice %117 {offsets = [0, 0], sizes = [4, 64], strides = [1, 1]} : vector<4x96xf32> to vector<4x64xf32>
    %120 = arith.addf %118, %119 : vector<4x64xf32>
    %121 = arith.negf %120 : vector<4x64xf32>
    %122 = math.exp %121 : vector<4x64xf32>
    %cst_56 = arith.constant 1.000000e+00 : f32
    %123 = vector.broadcast %cst_56 : f32 to vector<4x64xf32>
    %124 = arith.addf %123, %122 : vector<4x64xf32>
    %125 = arith.divf %123, %124 : vector<4x64xf32>
    %126 = vector.extract_strided_slice %125 {offsets = [0, 0], sizes = [4, 32], strides = [1, 1]} : vector<4x64xf32> to vector<4x32xf32>
    %127 = vector.extract_strided_slice %125 {offsets = [0, 32], sizes = [4, 32], strides = [1, 1]} : vector<4x64xf32> to vector<4x32xf32>
    %128 = vector.extract_strided_slice %112 {offsets = [0, 64], sizes = [4, 32], strides = [1, 1]} : vector<4x96xf32> to vector<4x32xf32>
    %129 = vector.extract_strided_slice %117 {offsets = [0, 64], sizes = [4, 32], strides = [1, 1]} : vector<4x96xf32> to vector<4x32xf32>
    %130 = arith.mulf %126, %129 : vector<4x32xf32>
    %131 = arith.addf %128, %130 : vector<4x32xf32>
    %132 = math.tanh %131 : vector<4x32xf32>
    %cst_57 = arith.constant 1.000000e+00 : f32
    %133 = vector.broadcast %cst_57 : f32 to vector<4x32xf32>
    %134 = arith.subf %133, %127 : vector<4x32xf32>
    %135 = arith.mulf %134, %132 : vector<4x32xf32>
    %136 = arith.mulf %127, %104 : vector<4x32xf32>
    %137 = arith.addf %135, %136 : vector<4x32xf32>
    %c3_i32 = arith.constant 3 : i32
    %138 = arith.index_cast %c3_i32 : i32 to index
    %c0_58 = arith.constant 0 : index
    %c0_59 = arith.constant 0 : index
    %139 = vector.load %arg6[%138, %c0_58, %c0_59] : memref<8x2x96xf32, #tpu.memory_space<vmem>>, vector<1x2x96xf32>
    %140 = vector.shape_cast %139 : vector<1x2x96xf32> to vector<2x96xf32>
    %c7_i32_60 = arith.constant 7 : i32
    %141 = arith.subi %c7_i32_60, %c3_i32 : i32
    %142 = arith.index_cast %141 : i32 to index
    %c0_61 = arith.constant 0 : index
    %c0_62 = arith.constant 0 : index
    %143 = vector.load %arg6[%142, %c0_61, %c0_62] : memref<8x2x96xf32, #tpu.memory_space<vmem>>, vector<1x2x96xf32>
    %144 = vector.shape_cast %143 : vector<1x2x96xf32> to vector<2x96xf32>
    %145 = tpu.concatenate %140, %144 in 0 : vector<2x96xf32>, vector<2x96xf32> -> vector<4x96xf32>
    %c0_63 = arith.constant 0 : index
    %c0_64 = arith.constant 0 : index
    %146 = vector.load %arg3[%c0_63, %c0_64] : memref<32x96xf32, #tpu.memory_space<vmem>>, vector<32x96xf32>
    %cst_65 = arith.constant dense<0.000000e+00> : vector<4x96xf32>
    %147 = tpu.matmul %137, %146, %cst_65 {dimension_numbers = #tpu.dot_dimension_numbers<[1], [0], [0], [1], [0, 0, 1, 1], [], []>} : vector<4x32xf32>, vector<32x96xf32>, vector<4x96xf32> -> vector<4x96xf32>
    %c0_66 = arith.constant 0 : index
    %c0_67 = arith.constant 0 : index
    %148 = vector.load %arg4[%c0_66, %c0_67] : memref<1x96xf32, #tpu.memory_space<vmem>>, vector<1x96xf32>
    %149 = vector.broadcast %148 : vector<1x96xf32> to vector<4x96xf32>
    %150 = arith.addf %147, %149 : vector<4x96xf32>
    %151 = vector.extract_strided_slice %145 {offsets = [0, 0], sizes = [4, 64], strides = [1, 1]} : vector<4x96xf32> to vector<4x64xf32>
    %152 = vector.extract_strided_slice %150 {offsets = [0, 0], sizes = [4, 64], strides = [1, 1]} : vector<4x96xf32> to vector<4x64xf32>
    %153 = arith.addf %151, %152 : vector<4x64xf32>
    %154 = arith.negf %153 : vector<4x64xf32>
    %155 = math.exp %154 : vector<4x64xf32>
    %cst_68 = arith.constant 1.000000e+00 : f32
    %156 = vector.broadcast %cst_68 : f32 to vector<4x64xf32>
    %157 = arith.addf %156, %155 : vector<4x64xf32>
    %158 = arith.divf %156, %157 : vector<4x64xf32>
    %159 = vector.extract_strided_slice %158 {offsets = [0, 0], sizes = [4, 32], strides = [1, 1]} : vector<4x64xf32> to vector<4x32xf32>
    %160 = vector.extract_strided_slice %158 {offsets = [0, 32], sizes = [4, 32], strides = [1, 1]} : vector<4x64xf32> to vector<4x32xf32>
    %161 = vector.extract_strided_slice %145 {offsets = [0, 64], sizes = [4, 32], strides = [1, 1]} : vector<4x96xf32> to vector<4x32xf32>
    %162 = vector.extract_strided_slice %150 {offsets = [0, 64], sizes = [4, 32], strides = [1, 1]} : vector<4x96xf32> to vector<4x32xf32>
    %163 = arith.mulf %159, %162 : vector<4x32xf32>
    %164 = arith.addf %161, %163 : vector<4x32xf32>
    %165 = math.tanh %164 : vector<4x32xf32>
    %cst_69 = arith.constant 1.000000e+00 : f32
    %166 = vector.broadcast %cst_69 : f32 to vector<4x32xf32>
    %167 = arith.subf %166, %160 : vector<4x32xf32>
    %168 = arith.mulf %167, %165 : vector<4x32xf32>
    %169 = arith.mulf %160, %137 : vector<4x32xf32>
    %170 = arith.addf %168, %169 : vector<4x32xf32>
    %c4_i32 = arith.constant 4 : i32
    %171 = arith.index_cast %c4_i32 : i32 to index
    %c0_70 = arith.constant 0 : index
    %c0_71 = arith.constant 0 : index
    %172 = vector.load %arg6[%171, %c0_70, %c0_71] : memref<8x2x96xf32, #tpu.memory_space<vmem>>, vector<1x2x96xf32>
    %173 = vector.shape_cast %172 : vector<1x2x96xf32> to vector<2x96xf32>
    %c7_i32_72 = arith.constant 7 : i32
    %174 = arith.subi %c7_i32_72, %c4_i32 : i32
    %175 = arith.index_cast %174 : i32 to index
    %c0_73 = arith.constant 0 : index
    %c0_74 = arith.constant 0 : index
    %176 = vector.load %arg6[%175, %c0_73, %c0_74] : memref<8x2x96xf32, #tpu.memory_space<vmem>>, vector<1x2x96xf32>
    %177 = vector.shape_cast %176 : vector<1x2x96xf32> to vector<2x96xf32>
    %178 = tpu.concatenate %173, %177 in 0 : vector<2x96xf32>, vector<2x96xf32> -> vector<4x96xf32>
    %c0_75 = arith.constant 0 : index
    %c0_76 = arith.constant 0 : index
    %179 = vector.load %arg3[%c0_75, %c0_76] : memref<32x96xf32, #tpu.memory_space<vmem>>, vector<32x96xf32>
    %cst_77 = arith.constant dense<0.000000e+00> : vector<4x96xf32>
    %180 = tpu.matmul %170, %179, %cst_77 {dimension_numbers = #tpu.dot_dimension_numbers<[1], [0], [0], [1], [0, 0, 1, 1], [], []>} : vector<4x32xf32>, vector<32x96xf32>, vector<4x96xf32> -> vector<4x96xf32>
    %c0_78 = arith.constant 0 : index
    %c0_79 = arith.constant 0 : index
    %181 = vector.load %arg4[%c0_78, %c0_79] : memref<1x96xf32, #tpu.memory_space<vmem>>, vector<1x96xf32>
    %182 = vector.broadcast %181 : vector<1x96xf32> to vector<4x96xf32>
    %183 = arith.addf %180, %182 : vector<4x96xf32>
    %184 = vector.extract_strided_slice %178 {offsets = [0, 0], sizes = [4, 64], strides = [1, 1]} : vector<4x96xf32> to vector<4x64xf32>
    %185 = vector.extract_strided_slice %183 {offsets = [0, 0], sizes = [4, 64], strides = [1, 1]} : vector<4x96xf32> to vector<4x64xf32>
    %186 = arith.addf %184, %185 : vector<4x64xf32>
    %187 = arith.negf %186 : vector<4x64xf32>
    %188 = math.exp %187 : vector<4x64xf32>
    %cst_80 = arith.constant 1.000000e+00 : f32
    %189 = vector.broadcast %cst_80 : f32 to vector<4x64xf32>
    %190 = arith.addf %189, %188 : vector<4x64xf32>
    %191 = arith.divf %189, %190 : vector<4x64xf32>
    %192 = vector.extract_strided_slice %191 {offsets = [0, 0], sizes = [4, 32], strides = [1, 1]} : vector<4x64xf32> to vector<4x32xf32>
    %193 = vector.extract_strided_slice %191 {offsets = [0, 32], sizes = [4, 32], strides = [1, 1]} : vector<4x64xf32> to vector<4x32xf32>
    %194 = vector.extract_strided_slice %178 {offsets = [0, 64], sizes = [4, 32], strides = [1, 1]} : vector<4x96xf32> to vector<4x32xf32>
    %195 = vector.extract_strided_slice %183 {offsets = [0, 64], sizes = [4, 32], strides = [1, 1]} : vector<4x96xf32> to vector<4x32xf32>
    %196 = arith.mulf %192, %195 : vector<4x32xf32>
    %197 = arith.addf %194, %196 : vector<4x32xf32>
    %198 = math.tanh %197 : vector<4x32xf32>
    %cst_81 = arith.constant 1.000000e+00 : f32
    %199 = vector.broadcast %cst_81 : f32 to vector<4x32xf32>
    %200 = arith.subf %199, %193 : vector<4x32xf32>
    %201 = arith.mulf %200, %198 : vector<4x32xf32>
    %202 = arith.mulf %193, %170 : vector<4x32xf32>
    %203 = arith.addf %201, %202 : vector<4x32xf32>
    %c5_i32 = arith.constant 5 : i32
    %204 = arith.index_cast %c5_i32 : i32 to index
    %c0_82 = arith.constant 0 : index
    %c0_83 = arith.constant 0 : index
    %205 = vector.load %arg6[%204, %c0_82, %c0_83] : memref<8x2x96xf32, #tpu.memory_space<vmem>>, vector<1x2x96xf32>
    %206 = vector.shape_cast %205 : vector<1x2x96xf32> to vector<2x96xf32>
    %c7_i32_84 = arith.constant 7 : i32
    %207 = arith.subi %c7_i32_84, %c5_i32 : i32
    %208 = arith.index_cast %207 : i32 to index
    %c0_85 = arith.constant 0 : index
    %c0_86 = arith.constant 0 : index
    %209 = vector.load %arg6[%208, %c0_85, %c0_86] : memref<8x2x96xf32, #tpu.memory_space<vmem>>, vector<1x2x96xf32>
    %210 = vector.shape_cast %209 : vector<1x2x96xf32> to vector<2x96xf32>
    %211 = tpu.concatenate %206, %210 in 0 : vector<2x96xf32>, vector<2x96xf32> -> vector<4x96xf32>
    %c0_87 = arith.constant 0 : index
    %c0_88 = arith.constant 0 : index
    %212 = vector.load %arg3[%c0_87, %c0_88] : memref<32x96xf32, #tpu.memory_space<vmem>>, vector<32x96xf32>
    %cst_89 = arith.constant dense<0.000000e+00> : vector<4x96xf32>
    %213 = tpu.matmul %203, %212, %cst_89 {dimension_numbers = #tpu.dot_dimension_numbers<[1], [0], [0], [1], [0, 0, 1, 1], [], []>} : vector<4x32xf32>, vector<32x96xf32>, vector<4x96xf32> -> vector<4x96xf32>
    %c0_90 = arith.constant 0 : index
    %c0_91 = arith.constant 0 : index
    %214 = vector.load %arg4[%c0_90, %c0_91] : memref<1x96xf32, #tpu.memory_space<vmem>>, vector<1x96xf32>
    %215 = vector.broadcast %214 : vector<1x96xf32> to vector<4x96xf32>
    %216 = arith.addf %213, %215 : vector<4x96xf32>
    %217 = vector.extract_strided_slice %211 {offsets = [0, 0], sizes = [4, 64], strides = [1, 1]} : vector<4x96xf32> to vector<4x64xf32>
    %218 = vector.extract_strided_slice %216 {offsets = [0, 0], sizes = [4, 64], strides = [1, 1]} : vector<4x96xf32> to vector<4x64xf32>
    %219 = arith.addf %217, %218 : vector<4x64xf32>
    %220 = arith.negf %219 : vector<4x64xf32>
    %221 = math.exp %220 : vector<4x64xf32>
    %cst_92 = arith.constant 1.000000e+00 : f32
    %222 = vector.broadcast %cst_92 : f32 to vector<4x64xf32>
    %223 = arith.addf %222, %221 : vector<4x64xf32>
    %224 = arith.divf %222, %223 : vector<4x64xf32>
    %225 = vector.extract_strided_slice %224 {offsets = [0, 0], sizes = [4, 32], strides = [1, 1]} : vector<4x64xf32> to vector<4x32xf32>
    %226 = vector.extract_strided_slice %224 {offsets = [0, 32], sizes = [4, 32], strides = [1, 1]} : vector<4x64xf32> to vector<4x32xf32>
    %227 = vector.extract_strided_slice %211 {offsets = [0, 64], sizes = [4, 32], strides = [1, 1]} : vector<4x96xf32> to vector<4x32xf32>
    %228 = vector.extract_strided_slice %216 {offsets = [0, 64], sizes = [4, 32], strides = [1, 1]} : vector<4x96xf32> to vector<4x32xf32>
    %229 = arith.mulf %225, %228 : vector<4x32xf32>
    %230 = arith.addf %227, %229 : vector<4x32xf32>
    %231 = math.tanh %230 : vector<4x32xf32>
    %cst_93 = arith.constant 1.000000e+00 : f32
    %232 = vector.broadcast %cst_93 : f32 to vector<4x32xf32>
    %233 = arith.subf %232, %226 : vector<4x32xf32>
    %234 = arith.mulf %233, %231 : vector<4x32xf32>
    %235 = arith.mulf %226, %203 : vector<4x32xf32>
    %236 = arith.addf %234, %235 : vector<4x32xf32>
    %c6_i32 = arith.constant 6 : i32
    %237 = arith.index_cast %c6_i32 : i32 to index
    %c0_94 = arith.constant 0 : index
    %c0_95 = arith.constant 0 : index
    %238 = vector.load %arg6[%237, %c0_94, %c0_95] : memref<8x2x96xf32, #tpu.memory_space<vmem>>, vector<1x2x96xf32>
    %239 = vector.shape_cast %238 : vector<1x2x96xf32> to vector<2x96xf32>
    %c7_i32_96 = arith.constant 7 : i32
    %240 = arith.subi %c7_i32_96, %c6_i32 : i32
    %241 = arith.index_cast %240 : i32 to index
    %c0_97 = arith.constant 0 : index
    %c0_98 = arith.constant 0 : index
    %242 = vector.load %arg6[%241, %c0_97, %c0_98] : memref<8x2x96xf32, #tpu.memory_space<vmem>>, vector<1x2x96xf32>
    %243 = vector.shape_cast %242 : vector<1x2x96xf32> to vector<2x96xf32>
    %244 = tpu.concatenate %239, %243 in 0 : vector<2x96xf32>, vector<2x96xf32> -> vector<4x96xf32>
    %c0_99 = arith.constant 0 : index
    %c0_100 = arith.constant 0 : index
    %245 = vector.load %arg3[%c0_99, %c0_100] : memref<32x96xf32, #tpu.memory_space<vmem>>, vector<32x96xf32>
    %cst_101 = arith.constant dense<0.000000e+00> : vector<4x96xf32>
    %246 = tpu.matmul %236, %245, %cst_101 {dimension_numbers = #tpu.dot_dimension_numbers<[1], [0], [0], [1], [0, 0, 1, 1], [], []>} : vector<4x32xf32>, vector<32x96xf32>, vector<4x96xf32> -> vector<4x96xf32>
    %c0_102 = arith.constant 0 : index
    %c0_103 = arith.constant 0 : index
    %247 = vector.load %arg4[%c0_102, %c0_103] : memref<1x96xf32, #tpu.memory_space<vmem>>, vector<1x96xf32>
    %248 = vector.broadcast %247 : vector<1x96xf32> to vector<4x96xf32>
    %249 = arith.addf %246, %248 : vector<4x96xf32>
    %250 = vector.extract_strided_slice %244 {offsets = [0, 0], sizes = [4, 64], strides = [1, 1]} : vector<4x96xf32> to vector<4x64xf32>
    %251 = vector.extract_strided_slice %249 {offsets = [0, 0], sizes = [4, 64], strides = [1, 1]} : vector<4x96xf32> to vector<4x64xf32>
    %252 = arith.addf %250, %251 : vector<4x64xf32>
    %253 = arith.negf %252 : vector<4x64xf32>
    %254 = math.exp %253 : vector<4x64xf32>
    %cst_104 = arith.constant 1.000000e+00 : f32
    %255 = vector.broadcast %cst_104 : f32 to vector<4x64xf32>
    %256 = arith.addf %255, %254 : vector<4x64xf32>
    %257 = arith.divf %255, %256 : vector<4x64xf32>
    %258 = vector.extract_strided_slice %257 {offsets = [0, 0], sizes = [4, 32], strides = [1, 1]} : vector<4x64xf32> to vector<4x32xf32>
    %259 = vector.extract_strided_slice %257 {offsets = [0, 32], sizes = [4, 32], strides = [1, 1]} : vector<4x64xf32> to vector<4x32xf32>
    %260 = vector.extract_strided_slice %244 {offsets = [0, 64], sizes = [4, 32], strides = [1, 1]} : vector<4x96xf32> to vector<4x32xf32>
    %261 = vector.extract_strided_slice %249 {offsets = [0, 64], sizes = [4, 32], strides = [1, 1]} : vector<4x96xf32> to vector<4x32xf32>
    %262 = arith.mulf %258, %261 : vector<4x32xf32>
    %263 = arith.addf %260, %262 : vector<4x32xf32>
    %264 = math.tanh %263 : vector<4x32xf32>
    %cst_105 = arith.constant 1.000000e+00 : f32
    %265 = vector.broadcast %cst_105 : f32 to vector<4x32xf32>
    %266 = arith.subf %265, %259 : vector<4x32xf32>
    %267 = arith.mulf %266, %264 : vector<4x32xf32>
    %268 = arith.mulf %259, %236 : vector<4x32xf32>
    %269 = arith.addf %267, %268 : vector<4x32xf32>
    %c7_i32_106 = arith.constant 7 : i32
    %270 = arith.index_cast %c7_i32_106 : i32 to index
    %c0_107 = arith.constant 0 : index
    %c0_108 = arith.constant 0 : index
    %271 = vector.load %arg6[%270, %c0_107, %c0_108] : memref<8x2x96xf32, #tpu.memory_space<vmem>>, vector<1x2x96xf32>
    %272 = vector.shape_cast %271 : vector<1x2x96xf32> to vector<2x96xf32>
    %c7_i32_109 = arith.constant 7 : i32
    %273 = arith.subi %c7_i32_109, %c7_i32_106 : i32
    %274 = arith.index_cast %273 : i32 to index
    %c0_110 = arith.constant 0 : index
    %c0_111 = arith.constant 0 : index
    %275 = vector.load %arg6[%274, %c0_110, %c0_111] : memref<8x2x96xf32, #tpu.memory_space<vmem>>, vector<1x2x96xf32>
    %276 = vector.shape_cast %275 : vector<1x2x96xf32> to vector<2x96xf32>
    %277 = tpu.concatenate %272, %276 in 0 : vector<2x96xf32>, vector<2x96xf32> -> vector<4x96xf32>
    %c0_112 = arith.constant 0 : index
    %c0_113 = arith.constant 0 : index
    %278 = vector.load %arg3[%c0_112, %c0_113] : memref<32x96xf32, #tpu.memory_space<vmem>>, vector<32x96xf32>
    %cst_114 = arith.constant dense<0.000000e+00> : vector<4x96xf32>
    %279 = tpu.matmul %269, %278, %cst_114 {dimension_numbers = #tpu.dot_dimension_numbers<[1], [0], [0], [1], [0, 0, 1, 1], [], []>} : vector<4x32xf32>, vector<32x96xf32>, vector<4x96xf32> -> vector<4x96xf32>
    %c0_115 = arith.constant 0 : index
    %c0_116 = arith.constant 0 : index
    %280 = vector.load %arg4[%c0_115, %c0_116] : memref<1x96xf32, #tpu.memory_space<vmem>>, vector<1x96xf32>
    %281 = vector.broadcast %280 : vector<1x96xf32> to vector<4x96xf32>
    %282 = arith.addf %279, %281 : vector<4x96xf32>
    %283 = vector.extract_strided_slice %277 {offsets = [0, 0], sizes = [4, 64], strides = [1, 1]} : vector<4x96xf32> to vector<4x64xf32>
    %284 = vector.extract_strided_slice %282 {offsets = [0, 0], sizes = [4, 64], strides = [1, 1]} : vector<4x96xf32> to vector<4x64xf32>
    %285 = arith.addf %283, %284 : vector<4x64xf32>
    %286 = arith.negf %285 : vector<4x64xf32>
    %287 = math.exp %286 : vector<4x64xf32>
    %cst_117 = arith.constant 1.000000e+00 : f32
    %288 = vector.broadcast %cst_117 : f32 to vector<4x64xf32>
    %289 = arith.addf %288, %287 : vector<4x64xf32>
    %290 = arith.divf %288, %289 : vector<4x64xf32>
    %291 = vector.extract_strided_slice %290 {offsets = [0, 0], sizes = [4, 32], strides = [1, 1]} : vector<4x64xf32> to vector<4x32xf32>
    %292 = vector.extract_strided_slice %290 {offsets = [0, 32], sizes = [4, 32], strides = [1, 1]} : vector<4x64xf32> to vector<4x32xf32>
    %293 = vector.extract_strided_slice %277 {offsets = [0, 64], sizes = [4, 32], strides = [1, 1]} : vector<4x96xf32> to vector<4x32xf32>
    %294 = vector.extract_strided_slice %282 {offsets = [0, 64], sizes = [4, 32], strides = [1, 1]} : vector<4x96xf32> to vector<4x32xf32>
    %295 = arith.mulf %291, %294 : vector<4x32xf32>
    %296 = arith.addf %293, %295 : vector<4x32xf32>
    %297 = math.tanh %296 : vector<4x32xf32>
    %cst_118 = arith.constant 1.000000e+00 : f32
    %298 = vector.broadcast %cst_118 : f32 to vector<4x32xf32>
    %299 = arith.subf %298, %292 : vector<4x32xf32>
    %300 = arith.mulf %299, %297 : vector<4x32xf32>
    %301 = arith.mulf %292, %269 : vector<4x32xf32>
    %302 = arith.addf %300, %301 : vector<4x32xf32>
    %c8_i32 = arith.constant 8 : i32
    %303 = vector.extract_strided_slice %302 {offsets = [0, 0], sizes = [2, 32], strides = [1, 1]} : vector<4x32xf32> to vector<2x32xf32>
    %304 = vector.extract_strided_slice %302 {offsets = [2, 0], sizes = [2, 32], strides = [1, 1]} : vector<4x32xf32> to vector<2x32xf32>
    %305 = arith.addf %303, %304 : vector<2x32xf32>
    %c0_119 = arith.constant 0 : index
    %c0_120 = arith.constant 0 : index
    %306 = vector.load %arg5[%c0_119, %c0_120] : memref<2x32xf32, #tpu.memory_space<vmem>>, vector<2x32xf32>
    tpu.vector_store %arg5[%c0_119, %c0_120], %305 {strides = array<i32>} : memref<2x32xf32, #tpu.memory_space<vmem>>, vector<2x32xf32>,
    return
  }
}

</mosaic_0001>

<bundles_post_ra>
// kernel: trd_encoder_forward.1
= control target key start
LH: loop header
LB: loop body
LE: loop exit
PB: predicated region body
PF: predicated region fallthrough
CT: control target
= control target key end

     0   :  { %10 = vsyncpa [#allocation4], 0  ;;  %s1594_s0 = inlined_call_operand.vmem [shape: f32[16,32], index: 0, kind: input, shape index: {}]   ;;  %s1595_s1 = inlined_call_operand.vmem [shape: f32[32,96], index: 1, kind: input, shape index: {}]   ;;  %s1596_s2 = inlined_call_operand.vmem [shape: f32[1,96], index: 2, kind: input, shape index: {}]   ;;  %s1597_s3 = inlined_call_operand.hbm [shape: f32[32,96], index: 3, kind: input, shape index: {}]   ;;  %s1598_s4 = inlined_call_operand.vmem [shape: f32[1,96], index: 4, kind: input, shape index: {}]   ;;  %s1599_s5 = inlined_call_operand.hbm [shape: f32[2,32], index: 5, kind: output, shape index: {}]  }
   0x1   :  { %11 = vsyncpa [#allocation5], 0  ;;  %s1357_s18 = smov [#allocation3]   ;;  %s1309_s22 = scalar_lea.hbm %s1597_s3, 512 }
   0x2   :  { %s23_s19 = sshll.u32 %s1357_s18, 4  ;;  %p1310_p0 = scmp.ne.s32.totalorder %s1597_s3, %s1309_s22  ;;  %s24_s19 = int_to_ptr.vmem [resolvable:$true] %s23_s19 }
   0x3   :  { %p1313_p1 = scmp.lt.u32.totalorder %s1309_s22, %s1597_s3 }
   0x5   :  { %p1315_p2 = pnand %p1313_p1, %p1310_p0 }
   0x7   :  { %1318 = shalt.err (!%p1315_p2)
}
   0x8   :  { %s1319_s27 = scalar_lea.vmem %s24_s19, 512  ;;  %p1324_p4 = scmp.lt.s32.totalorder %s24_s19, %s24_s19 }
   0x9   :  { %p1320_p3 = scmp.ne.s32.totalorder %s24_s19, %s1319_s27  ;;  %p1325_p5 = scmp.lt.s32.totalorder %s1319_s27, %s1319_s27 }
   0xb   :  { %p1326_p6 = por %p1325_p5, %p1324_p4 }
   0xd   :  { %p1327_p7 = pnand %p1326_p6, %p1320_p3 }
   0xf   :  { %1330 = shalt.err (!%p1327_p7)
}
  0x10   :  { %s1358_s28 = smov 128   ;;  %s1359_s29 = smov 8  }
  0x11   :  { %29 = dma.hbm_to_vmem [thread:$0]  %s1597_s3, 512, %s24_s19, [#allocation4], %s1358_s28, %s1358_s28, %s1359_s29  }
  0x12   :  { %1353 = dma.done.wait [#allocation4], 512  }
  0x13   :  { %1354 = vsyncadd [#allocation4], 4294966784  ;;  %v1360_v0 = vmov 0.0|0.0   ;;  %vm1361_vm0 = vmmov 0   ;;  %v1362_v1 = vmov 0.0   ;;  %v37_v2 = vld [vmem:[%s1595_s1] sm:$0xff] }
  0x14   :  { %1204 = vmatprep.subr.bf16.mxu1 %v1360_v0  ;;  %1116 = vmatprep.mubr.msk.f32.mxu1 %vm1361_vm0, %v1362_v1  ;;  %v38_v3 = vld [vmem:[%s1595_s1 + $0x8] sm:$0xff]  ;;  %v156_v4 = vld [vmem:[#allocation3] sm:$0xff]  ;;  %vm48_vm1 = vcmask 261120   ;;  %v157_v6 = vld [vmem:[#allocation3 + $0x8] sm:$0xff]  ;;  %vm133_vm2 = vcmask 781314   ;;  %vm136_vm3 = vcmask 783364  }
  0x15   :  { %v1196_v5 = vpack.c.bf16 %v38_v3, %v37_v2  ;;  %v39_v7 = vld [vmem:[%s1595_s1 + $0x10] sm:$0xff]  ;;  %v40_v8 = vld [vmem:[%s1595_s1 + $0x18] sm:$0xff]  ;;  %v1423_v9 = vpack.c.bf16 %v157_v6, %v156_v4  ;;  %v158_v11 = vld [vmem:[#allocation3 + $0x10] sm:$0xff]  ;;  %vm139_vm4 = vcmask 785414   ;;  %vm130_vm5 = vcmask 779264   ;;  %s1365_s20 = smov [#allocation6]  }
  0x16   :  { %v1200_v10 = vpack.c.bf16 %v40_v8, %v39_v7  ;;  %v159_v12 = vld [vmem:[#allocation3 + $0x18] sm:$0xff]  ;;  %v35_v13 = vld [vmem:[%s1594_s0] sm:$0xff]  ;;  %vm154_vm6 = vcmask 1041408   ;;  %s1023_s21 = sshll.u32 %s1365_s20, 4  ;;  %vm1015_vm7 = vcmask 254976   ;;  %s1024_s21 = int_to_ptr.vmem [resolvable:$true] %s1023_s21 }
  0x17   :  { %1197 = vmatprep.subr.bf16.mxu0 %v1196_v5  ;;  %1105 = vmatprep.mubr.msk.f32.mxu0 %vm48_vm1, %v35_v13  ;;  %v1430_v14 = vpack.c.bf16 %v159_v12, %v158_v11  ;;  %v36_v15 = vld [vmem:[%s1594_s0 + $0x8] sm:$0xff]  ;;  %v1456_v16 = vld [vmem:[%s1598_s4] ss:$0 sm:$0xff]  ;;  %s1364_s4 = smov 96   ;;  %s1331_s22 = scalar_lea.vmem %s1024_s21, 32 }
  0x18   :  { %1206 = vmatpush3.bf16.msra.mxu1 %v1423_v9  ;;  %1199 = vmatpush3.bf16.msra.mxu0 %v1196_v5  ;;  %v1032_v17 = vld [vmem:[%s1596_s2] ss:$0 sm:$0xff]  ;;  %s1363_s2 = smov 64   ;;  %p1332_p8 = scmp.ne.s32.totalorder %s1024_s21, %s1331_s22 }
  0x19   :  { %1207 = vmatprep.subr.bf16.mxu1 %v1360_v0  ;;  %1201 = vmatprep.subr.bf16.mxu0 %v1200_v10  ;;  %p1336_p9 = scmp.lt.s32.totalorder %s1024_s21, %s1024_s21  ;;  %p1337_p10 = scmp.lt.s32.totalorder %s1331_s22, %s1331_s22 }
  0x1b   :  { %p1338_p11 = por %p1337_p10, %p1336_p9 }
  0x1c   :  { %1209 = vmatpush3.bf16.msra.mxu1 %v1430_v14  ;;  %1203 = vmatpush3.bf16.msra.mxu0 %v1200_v10 }
  0x1d   :  { %1210 = vmatprep.subr.bf16.mxu0 %v1360_v0  ;;  %1216 = vmatprep.subr.bf16.mxu1 %v1360_v0  ;;  %p1339_p12 = pnand %p1338_p11, %p1332_p8 }
  0x1f   :  { %1117 = vmatmul.mubr.f32.vlgmr.msra.gmra.mrb[0].mxu1 %v1362_v1  ;;  %1106 = vmatmul.mubr.msk.f32.vlgmr.msra.gmra.mrb[0].mxu0 %vm48_vm1, %v36_v15 }
  0x20   :  { %1212 = vmatpush3.bf16.msra.mxu0 %v1423_v9  ;;  %1127 = vmatprep.mubr.msk.f32.mxu0 %vm1361_vm0, %v1362_v1 }
  0x21   :  { %1213 = vmatprep.subr.bf16.mxu0 %v1360_v0  ;;  %1218 = vmatpush3.bf16.msra.mxu1 %v1423_v9 }
  0x22   :  { %1219 = vmatprep.subr.bf16.mxu1 %v1360_v0  ;;  %1138 = vmatprep.mubr.msk.f32.mxu1 %vm1361_vm0, %v1362_v1 }
  0x24   :  { %1215 = vmatpush3.bf16.msra.mxu0 %v1430_v14 }
  0x25   :  { %1221 = vmatpush3.bf16.msra.mxu1 %v1430_v14  ;;  %1222 = vmatprep.subr.bf16.mxu0 %v1360_v0 }
  0x26   :  { %1228 = vmatprep.subr.bf16.mxu1 %v1360_v0 }
  0xf2   :  { %v236_v18 = vpop.f32.mrb[0].mxu1  ;;  %v1107_v19 = vpop.f32.mrb[0].mxu0 }
  0xf3   :  { %v237_v20 = vadd.f32 %v1456_v16, %v236_v18  ;;  %v127_v21 = vadd.f32 %v1107_v19, %v1032_v17  ;;  %v1118_v22 = vpop.f32.mrb[1].mxu1  ;;  %v121_v23 = vpop.f32.mrb[1].mxu0 }
  0xf4   :  { %v122_v24 = vadd.f32 %v1032_v17, %v121_v23 }
  0xf5   :  { %142 = vst.msk [vmem:[#allocation2 + $0x8] sm:$0x3] %vm130_vm5, %v127_v21  ;;  %248 = vrot.lane.b32.xlu0 %v237_v20, %s1363_s2 }
  0xf6   :  { %144 = vst.msk [vmem:[#allocation2 + $0x8] sm:$0xc] %vm133_vm2, %v127_v21  ;;  %134 = vst.msk [vmem:[#allocation2] sm:$0xc] %vm133_vm2, %v122_v24 }
  0xf7   :  { %146 = vst.msk [vmem:[#allocation2 + $0x8] sm:$0x30] %vm136_vm3, %v127_v21  ;;  %137 = vst.msk [vmem:[#allocation2] sm:$0x30] %vm136_vm3, %v122_v24 }
  0xf8   :  { %148 = vst.msk [vmem:[#allocation2 + $0x8] sm:$0xc0] %vm139_vm4, %v127_v21  ;;  %140 = vst.msk [vmem:[#allocation2] sm:$0xc0] %vm139_vm4, %v122_v24 }
  0xf9   :  { %131 = vst.msk [vmem:[#allocation2] sm:$0x3] %vm130_vm5, %v122_v24 }
  0xfc   :  { %v1477_v34 = vld [vmem:[#allocation2 + $0x8] sm:$0x3] }
  0xfd   :  { %v266_v25 = vld [vmem:[#allocation2 + $0x2] sm:$0x3]  ;;  %v1475_v33 = vld [vmem:[#allocation2 + $0xa] sm:$0x3] }
  0xfe   :  { %v798_v26 = vrot.slane %v266_v25, 6  ;;  %v1469_v27 = vld [vmem:[#allocation2 + $0x4] sm:$0x3]  ;;  %v267_v29 = vld [vmem:[#allocation2 + $0xc] sm:$0x3]  ;;  %v376_v24 = vrot.slane %v1475_v33, 6 }
  0xff   :  { %v1471_v28 = vld [vmem:[#allocation2 + $0x6] sm:$0x3]  ;;  %v693_v30 = vrot.slane %v1469_v27, 6  ;;  %v150_v39 = vld [vmem:[#allocation2 + $0xe] sm:$0x3]  ;;  %v269_v62 = vrot.slane %v267_v29, 6 }
 0x100   :  { %v588_v31 = vrot.slane %v1471_v28, 6  ;;  %v149_v32 = vld [vmem:[#allocation2] sm:$0x3]  ;;  %v1480_v35 = vsel %vm154_vm6, %v267_v29, %v798_v26  ;;  %v152_v41 = vrot.slane %v150_v39, 6 }
 0x101   :  { %v1488_v37 = vsel %vm154_vm6, %v1475_v33, %v693_v30  ;;  %v903_v38 = vrot.slane %v149_v32, 6  ;;  %v271_v63 = vsel %vm154_vm6, %v266_v25, %v269_v62  ;;  %v378_v25 = vsel %vm154_vm6, %v1469_v27, %v376_v24 }
 0x102   :  { %v1484_v36 = vsel %vm154_vm6, %v1477_v34, %v588_v31  ;;  %v155_v42 = vsel %vm154_vm6, %v149_v32, %v152_v41 }
 0x103   :  { %v1491_v40 = vsel %vm154_vm6, %v150_v39, %v903_v38  ;;  %v240_v43 = vadd.f32 %v237_v20, %v155_v42 }
 0x105   :  { %v1036_v44 = vmul.f32 -1.442695, %v240_v43 }
 0x107   :  { %1261 = vpow2.f32 %v1036_v44 }
 0x111   :  { %v1262_v45 = vpop.eup %1261 }
 0x112   :  { %v244_v46 = vadd.f32 1.0, %v1262_v45 }
 0x114   :  { %1263 = vrcp.f32 %v244_v46 }
 0x11e   :  { %v1264_v47 = vpop.eup %1263 }
 0x11f   :  { %v258_v53 = vsub.f32 1.0, %v1264_v47  ;;  %v264_v55 = vmul.f32 0.0, %v1264_v47 }
 0x167   :  { %v249_v48 = vpop.permute.xlu0 %248 }
 0x168   :  { %v251_v49 = vmul.f32 %v1264_v47, %v249_v48 }
 0x16a   :  { %253 = vrot.lane.b32.xlu0 %v251_v49, %s1363_s2 }
 0x1dc   :  { %v254_v50 = vpop.permute.xlu0 %253 }
 0x1dd   :  { %v256_v51 = vadd.f32 %v254_v50, %v155_v42 }
 0x1df   :  { %1265 = vtanh.f32 %v256_v51  ;;  %v483_v51 = vrot.slane %v1477_v34, 6 }
 0x1e9   :  { %v1266_v52 = vpop.eup %1265 }
 0x1ea   :  { %260 = vrot.lane.b32.xlu1 %v1266_v52, %s1364_s4  ;;  %v485_v52 = vsel %vm154_vm6, %v1471_v28, %v483_v51 }
 0x25c   :  { %v261_v54 = vpop.permute.xlu1 %260 }
 0x25d   :  { %v263_v56 = vmul.f32 %v261_v54, %v258_v53 }
 0x25f   :  { %v265_v57 = vadd.f32 %v264_v55, %v263_v56 }
 0x261   :  { %273 = vrot.lane.b32.xlu1 %v265_v57, %s1364_s4 }
 0x2d3   :  { %v274_v58 = vpop.permute.xlu1 %273 }
 0x2d4   :  { %1128 = vmatmul.mubr.msk.f32.vlgmr.msra.gmra.mrb[2].mxu0 %vm48_vm1, %v274_v58 }
 0x2d5   :  { %1224 = vmatpush3.bf16.msra.mxu0 %v1423_v9  ;;  %1149 = vmatprep.mubr.msk.f32.mxu0 %vm1361_vm0, %v1362_v1 }
 0x2d6   :  { %1225 = vmatprep.subr.bf16.mxu0 %v1360_v0 }
 0x2d9   :  { %1227 = vmatpush3.bf16.msra.mxu0 %v1430_v14 }
 0x2da   :  { %1234 = vmatprep.subr.bf16.mxu0 %v1360_v0 }
 0x3a7   :  { %v343_v59 = vpop.f32.mrb[2].mxu0 }
 0x3a8   :  { %v344_v60 = vadd.f32 %v1456_v16, %v343_v59  ;;  %v1129_v61 = vpop.f32.mrb[3].mxu0 }
 0x3aa   :  { %355 = vrot.lane.b32.xlu0 %v344_v60, %s1363_s2  ;;  %v347_v2 = vadd.f32 %v344_v60, %v271_v63 }
 0x3ac   :  { %v1038_v3 = vmul.f32 -1.442695, %v347_v2 }
 0x3ae   :  { %1267 = vpow2.f32 %v1038_v3 }
 0x3b8   :  { %v1268_v4 = vpop.eup %1267 }
 0x3b9   :  { %v351_v5 = vadd.f32 1.0, %v1268_v4 }
 0x3bb   :  { %1269 = vrcp.f32 %v351_v5 }
 0x3c5   :  { %v1270_v6 = vpop.eup %1269 }
 0x3c6   :  { %v365_v13 = vsub.f32 1.0, %v1270_v6  ;;  %v371_v17 = vmul.f32 %v1270_v6, %v265_v57 }
 0x41c   :  { %v356_v7 = vpop.permute.xlu0 %355 }
 0x41d   :  { %v358_v8 = vmul.f32 %v1270_v6, %v356_v7 }
 0x41f   :  { %360 = vrot.lane.b32.xlu1 %v358_v8, %s1363_s2 }
 0x491   :  { %v361_v10 = vpop.permute.xlu1 %360 }
 0x492   :  { %v363_v11 = vadd.f32 %v361_v10, %v271_v63 }
 0x494   :  { %1271 = vtanh.f32 %v363_v11 }
 0x49e   :  { %v1272_v12 = vpop.eup %1271 }
 0x49f   :  { %367 = vrot.lane.b32.xlu0 %v1272_v12, %s1364_s4 }
 0x511   :  { %v368_v15 = vpop.permute.xlu0 %367 }
 0x512   :  { %v370_v18 = vmul.f32 %v368_v15, %v365_v13 }
 0x514   :  { %v372_v19 = vadd.f32 %v371_v17, %v370_v18 }
 0x516   :  { %380 = vrot.lane.b32.xlu1 %v372_v19, %s1364_s4 }
 0x588   :  { %v381_v20 = vpop.permute.xlu1 %380 }
 0x589   :  { %1139 = vmatmul.mubr.msk.f32.vlgmr.msra.gmra.mrb[2].mxu1 %vm48_vm1, %v381_v20 }
 0x58a   :  { %1230 = vmatpush3.bf16.msra.mxu1 %v1423_v9  ;;  %1160 = vmatprep.mubr.msk.f32.mxu1 %vm1361_vm0, %v1362_v1 }
 0x58b   :  { %1231 = vmatprep.subr.bf16.mxu1 %v1360_v0 }
 0x58e   :  { %1233 = vmatpush3.bf16.msra.mxu1 %v1430_v14 }
 0x58f   :  { %1240 = vmatprep.subr.bf16.mxu1 %v1360_v0 }
 0x65c   :  { %v450_v21 = vpop.f32.mrb[2].mxu1 }
 0x65d   :  { %v451_v22 = vadd.f32 %v1456_v16, %v450_v21  ;;  %v1140_v23 = vpop.f32.mrb[3].mxu1 }
 0x65f   :  { %462 = vrot.lane.b32.xlu0 %v451_v22, %s1363_s2  ;;  %v454_v26 = vadd.f32 %v451_v22, %v378_v25 }
 0x661   :  { %v1040_v29 = vmul.f32 -1.442695, %v454_v26 }
 0x663   :  { %1273 = vpow2.f32 %v1040_v29 }
 0x66d   :  { %v1274_v30 = vpop.eup %1273 }
 0x66e   :  { %v458_v31 = vadd.f32 1.0, %v1274_v30 }
 0x670   :  { %1275 = vrcp.f32 %v458_v31 }
 0x67a   :  { %v1276_v32 = vpop.eup %1275 }
 0x67b   :  { %v472_v33 = vsub.f32 1.0, %v1276_v32  ;;  %v478_v27 = vmul.f32 %v1276_v32, %v372_v19 }
 0x6d1   :  { %v463_v38 = vpop.permute.xlu0 %462 }
 0x6d2   :  { %v465_v39 = vmul.f32 %v1276_v32, %v463_v38 }
 0x6d4   :  { %467 = vrot.lane.b32.xlu1 %v465_v39, %s1363_s2 }
 0x746   :  { %v468_v41 = vpop.permute.xlu1 %467 }
 0x747   :  { %v470_v42 = vadd.f32 %v468_v41, %v378_v25 }
 0x749   :  { %1277 = vtanh.f32 %v470_v42 }
 0x753   :  { %v1278_v43 = vpop.eup %1277 }
 0x754   :  { %474 = vrot.lane.b32.xlu0 %v1278_v43, %s1364_s4 }
 0x7c6   :  { %v475_v44 = vpop.permute.xlu0 %474 }
 0x7c7   :  { %v477_v45 = vmul.f32 %v475_v44, %v472_v33 }
 0x7c9   :  { %v479_v46 = vadd.f32 %v478_v27, %v477_v45 }
 0x7cb   :  { %487 = vrot.lane.b32.xlu1 %v479_v46, %s1364_s4 }
 0x83d   :  { %v488_v47 = vpop.permute.xlu1 %487 }
 0x83e   :  { %1150 = vmatmul.mubr.msk.f32.vlgmr.msra.gmra.mrb[4].mxu0 %vm48_vm1, %v488_v47 }
 0x83f   :  { %1236 = vmatpush3.bf16.msra.mxu0 %v1423_v9  ;;  %1171 = vmatprep.mubr.msk.f32.mxu0 %vm1361_vm0, %v1362_v1 }
 0x840   :  { %1237 = vmatprep.subr.bf16.mxu0 %v1360_v0 }
 0x843   :  { %1239 = vmatpush3.bf16.msra.mxu0 %v1430_v14 }
 0x844   :  { %1246 = vmatprep.subr.bf16.mxu0 %v1360_v0 }
 0x911   :  { %v557_v48 = vpop.f32.mrb[4].mxu0 }
 0x912   :  { %v558_v49 = vadd.f32 %v1456_v16, %v557_v48  ;;  %v1151_v50 = vpop.f32.mrb[5].mxu0 }
 0x914   :  { %569 = vrot.lane.b32.xlu0 %v558_v49, %s1363_s2  ;;  %v561_v53 = vadd.f32 %v558_v49, %v485_v52 }
 0x916   :  { %v1042_v54 = vmul.f32 -1.442695, %v561_v53 }
 0x918   :  { %1279 = vpow2.f32 %v1042_v54 }
 0x922   :  { %v1280_v55 = vpop.eup %1279 }
 0x923   :  { %v565_v56 = vadd.f32 1.0, %v1280_v55 }
 0x925   :  { %1281 = vrcp.f32 %v565_v56 }
 0x92f   :  { %v1282_v57 = vpop.eup %1281 }
 0x930   :  { %v579_v34 = vsub.f32 1.0, %v1282_v57  ;;  %v585_v28 = vmul.f32 %v1282_v57, %v479_v46 }
 0x986   :  { %v570_v58 = vpop.permute.xlu0 %569 }
 0x987   :  { %v572_v59 = vmul.f32 %v1282_v57, %v570_v58 }
 0x989   :  { %574 = vrot.lane.b32.xlu1 %v572_v59, %s1363_s2 }
 0x9fb   :  { %v575_v60 = vpop.permute.xlu1 %574 }
 0x9fc   :  { %v577_v61 = vadd.f32 %v575_v60, %v485_v52 }
 0x9fe   :  { %1283 = vtanh.f32 %v577_v61 }
 0xa08   :  { %v1284_v62 = vpop.eup %1283 }
 0xa09   :  { %581 = vrot.lane.b32.xlu0 %v1284_v62, %s1364_s4 }
 0xa7b   :  { %v582_v63 = vpop.permute.xlu0 %581 }
 0xa7c   :  { %v584_v2 = vmul.f32 %v582_v63, %v579_v34 }
 0xa7e   :  { %v586_v3 = vadd.f32 %v585_v28, %v584_v2 }
 0xa80   :  { %592 = vrot.lane.b32.xlu1 %v586_v3, %s1364_s4 }
 0xaf2   :  { %v593_v4 = vpop.permute.xlu1 %592 }
 0xaf3   :  { %1161 = vmatmul.mubr.msk.f32.vlgmr.msra.gmra.mrb[4].mxu1 %vm48_vm1, %v593_v4 }
 0xaf4   :  { %1242 = vmatpush3.bf16.msra.mxu1 %v1423_v9  ;;  %1182 = vmatprep.mubr.msk.f32.mxu1 %vm1361_vm0, %v1362_v1 }
 0xaf5   :  { %1243 = vmatprep.subr.bf16.mxu1 %v1360_v0 }
 0xaf8   :  { %1245 = vmatpush3.bf16.msra.mxu1 %v1430_v14 }
 0xbc6   :  { %v662_v5 = vpop.f32.mrb[4].mxu1 }
 0xbc7   :  { %v663_v6 = vadd.f32 %v1456_v16, %v662_v5  ;;  %v1162_v7 = vpop.f32.mrb[5].mxu1 }
 0xbc9   :  { %674 = vrot.lane.b32.xlu0 %v663_v6, %s1363_s2  ;;  %v666_v8 = vadd.f32 %v663_v6, %v1484_v36 }
 0xbcb   :  { %v1044_v10 = vmul.f32 -1.442695, %v666_v8 }
 0xbcd   :  { %1285 = vpow2.f32 %v1044_v10 }
 0xbd7   :  { %v1286_v11 = vpop.eup %1285 }
 0xbd8   :  { %v670_v12 = vadd.f32 1.0, %v1286_v11 }
 0xbda   :  { %1287 = vrcp.f32 %v670_v12 }
 0xbe4   :  { %v1288_v13 = vpop.eup %1287 }
 0xbe5   :  { %v684_v21 = vsub.f32 1.0, %v1288_v13  ;;  %v690_v23 = vmul.f32 %v1288_v13, %v586_v3 }
 0xc3b   :  { %v675_v15 = vpop.permute.xlu0 %674 }
 0xc3c   :  { %v677_v17 = vmul.f32 %v1288_v13, %v675_v15 }
 0xc3e   :  { %679 = vrot.lane.b32.xlu1 %v677_v17, %s1363_s2 }
 0xcb0   :  { %v680_v18 = vpop.permute.xlu1 %679 }
 0xcb1   :  { %v682_v19 = vadd.f32 %v680_v18, %v1484_v36 }
 0xcb3   :  { %1289 = vtanh.f32 %v682_v19 }
 0xcbd   :  { %v1290_v20 = vpop.eup %1289 }
 0xcbe   :  { %686 = vrot.lane.b32.xlu0 %v1290_v20, %s1364_s4 }
 0xd30   :  { %v687_v22 = vpop.permute.xlu0 %686 }
 0xd31   :  { %v689_v24 = vmul.f32 %v687_v22, %v684_v21 }
 0xd33   :  { %v691_v25 = vadd.f32 %v690_v23, %v689_v24 }
 0xd35   :  { %697 = vrot.lane.b32.xlu1 %v691_v25, %s1364_s4 }
 0xda7   :  { %v698_v26 = vpop.permute.xlu1 %697 }
 0xda8   :  { %1172 = vmatmul.mubr.msk.f32.vlgmr.msra.gmra.mrb[6].mxu0 %vm48_vm1, %v698_v26 }
 0xda9   :  { %1248 = vmatpush3.bf16.msra.mxu0 %v1423_v9  ;;  %1193 = vmatprep.mubr.msk.f32.mxu0 %vm1361_vm0, %v1362_v1 }
 0xdaa   :  { %1249 = vmatprep.subr.bf16.mxu0 %v1360_v0 }
 0xdad   :  { %1251 = vmatpush3.bf16.msra.mxu0 %v1430_v14 }
 0xe7b   :  { %v767_v36 = vpop.f32.mrb[6].mxu0 }
 0xe7c   :  { %v768_v29 = vadd.f32 %v1456_v16, %v767_v36  ;;  %v1173_v30 = vpop.f32.mrb[7].mxu0 }
 0xe7e   :  { %779 = vrot.lane.b32.xlu0 %v768_v29, %s1363_s2  ;;  %v771_v31 = vadd.f32 %v768_v29, %v1488_v37 }
 0xe80   :  { %v1046_v32 = vmul.f32 -1.442695, %v771_v31 }
 0xe82   :  { %1291 = vpow2.f32 %v1046_v32 }
 0xe8c   :  { %v1292_v38 = vpop.eup %1291 }
 0xe8d   :  { %v775_v39 = vadd.f32 1.0, %v1292_v38 }
 0xe8f   :  { %1293 = vrcp.f32 %v775_v39 }
 0xe99   :  { %v1294_v9 = vpop.eup %1293 }
 0xe9a   :  { %v789_v43 = vsub.f32 1.0, %v1294_v9  ;;  %v795_v44 = vmul.f32 %v1294_v9, %v691_v25 }
 0xef0   :  { %v780_v41 = vpop.permute.xlu0 %779 }
 0xef1   :  { %v782_v1 = vmul.f32 %v1294_v9, %v780_v41 }
 0xef3   :  { %784 = vrot.lane.b32.xlu1 %v782_v1, %s1363_s2 }
 0xf65   :  { %v785_v0 = vpop.permute.xlu1 %784 }
 0xf66   :  { %v787_v14 = vadd.f32 %v785_v0, %v1488_v37 }
 0xf68   :  { %1295 = vtanh.f32 %v787_v14 }
 0xf72   :  { %v1296_v42 = vpop.eup %1295 }
 0xf73   :  { %791 = vrot.lane.b32.xlu0 %v1296_v42, %s1364_s4 }
 0xfe5   :  { %v792_v33 = vpop.permute.xlu0 %791 }
 0xfe6   :  { %v794_v27 = vmul.f32 %v792_v33, %v789_v43 }
 0xfe8   :  { %v796_v45 = vadd.f32 %v795_v44, %v794_v27 }
 0xfea   :  { %802 = vrot.lane.b32.xlu1 %v796_v45, %s1364_s4 }
0x105c   :  { %v803_v46 = vpop.permute.xlu1 %802 }
0x105d   :  { %1183 = vmatmul.mubr.msk.f32.vlgmr.msra.gmra.mrb[6].mxu1 %vm48_vm1, %v803_v46 }
0x1130   :  { %v872_v47 = vpop.f32.mrb[6].mxu1 }
0x1131   :  { %v873_v48 = vadd.f32 %v1456_v16, %v872_v47  ;;  %v1184_v49 = vpop.f32.mrb[7].mxu1 }
0x1133   :  { %884 = vrot.lane.b32.xlu0 %v873_v48, %s1363_s2  ;;  %v876_v37 = vadd.f32 %v873_v48, %v1480_v35 }
0x1135   :  { %v1048_v50 = vmul.f32 -1.442695, %v876_v37 }
0x1137   :  { %1297 = vpow2.f32 %v1048_v50 }
0x1141   :  { %v1298_v51 = vpop.eup %1297 }
0x1142   :  { %v880_v52 = vadd.f32 1.0, %v1298_v51 }
0x1144   :  { %1299 = vrcp.f32 %v880_v52 }
0x114e   :  { %v1300_v53 = vpop.eup %1299 }
0x114f   :  { %v894_v59 = vsub.f32 1.0, %v1300_v53  ;;  %v900_v61 = vmul.f32 %v1300_v53, %v796_v45 }
0x11a5   :  { %v885_v54 = vpop.permute.xlu0 %884 }
0x11a6   :  { %v887_v55 = vmul.f32 %v1300_v53, %v885_v54 }
0x11a8   :  { %889 = vrot.lane.b32.xlu1 %v887_v55, %s1363_s2 }
0x121a   :  { %v890_v56 = vpop.permute.xlu1 %889 }
0x121b   :  { %v892_v57 = vadd.f32 %v890_v56, %v1480_v35 }
0x121d   :  { %1301 = vtanh.f32 %v892_v57 }
0x1227   :  { %v1302_v58 = vpop.eup %1301 }
0x1228   :  { %896 = vrot.lane.b32.xlu0 %v1302_v58, %s1364_s4 }
0x129a   :  { %v897_v60 = vpop.permute.xlu0 %896 }
0x129b   :  { %v899_v62 = vmul.f32 %v897_v60, %v894_v59 }
0x129d   :  { %v901_v34 = vadd.f32 %v900_v61, %v899_v62 }
0x129f   :  { %907 = vrot.lane.b32.xlu1 %v901_v34, %s1364_s4 }
0x1311   :  { %v908_v63 = vpop.permute.xlu1 %907 }
0x1312   :  { %1194 = vmatmul.mubr.msk.f32.vlgmr.msra.gmra.mrb[8].mxu0 %vm48_vm1, %v908_v63 }
0x13e5   :  { %v977_v28 = vpop.f32.mrb[8].mxu0 }
0x13e6   :  { %v978_v2 = vadd.f32 %v1456_v16, %v977_v28  ;;  %v1195_v3 = vpop.f32.mrb[9].mxu0 }
0x13e8   :  { %989 = vrot.lane.b32.xlu0 %v978_v2, %s1363_s2  ;;  %v981_v35 = vadd.f32 %v978_v2, %v1491_v40 }
0x13ea   :  { %v1050_v4 = vmul.f32 -1.442695, %v981_v35 }
0x13ec   :  { %1303 = vpow2.f32 %v1050_v4 }
0x13f6   :  { %v1304_v5 = vpop.eup %1303 }
0x13f7   :  { %v985_v6 = vadd.f32 1.0, %v1304_v5 }
0x13f9   :  { %1305 = vrcp.f32 %v985_v6 }
0x1403   :  { %v1306_v7 = vpop.eup %1305 }
0x1404   :  { %v999_v13 = vsub.f32 1.0, %v1306_v7  ;;  %v1005_v17 = vmul.f32 %v1306_v7, %v901_v34 }
0x145a   :  { %v990_v8 = vpop.permute.xlu0 %989 }
0x145b   :  { %v992_v10 = vmul.f32 %v1306_v7, %v990_v8 }
0x145d   :  { %994 = vrot.lane.b32.xlu1 %v992_v10, %s1363_s2 }
0x14cf   :  { %v995_v11 = vpop.permute.xlu1 %994 }
0x14d0   :  { %v997_v12 = vadd.f32 %v995_v11, %v1491_v40 }
0x14d2   :  { %1307 = vtanh.f32 %v997_v12 }
0x14dc   :  { %v1308_v16 = vpop.eup %1307 }
0x14dd   :  { %1001 = vrot.lane.b32.xlu0 %v1308_v16, %s1364_s4 }
0x154f   :  { %v1002_v15 = vpop.permute.xlu0 %1001 }
0x1550   :  { %v1004_v18 = vmul.f32 %v1002_v15, %v999_v13 }
0x1552   :  { %v1006_v19 = vadd.f32 %v1005_v17, %v1004_v18 }
0x1554   :  { %v1008_v20 = vrot.slane %v1006_v19, 2 }
0x1556   :  { %v1010_v21 = vadd.f32 %v1008_v20, %v1006_v19 }
0x1558   :  { %1012 = vrot.lane.b32.xlu1 %v1010_v21, %s1364_s4 }
0x15ca   :  { %v1013_v22 = vpop.permute.xlu1 %1012 }
0x15cb   :  { %1016 = vst.msk [vmem:[#allocation6] sm:$0x3] %vm1015_vm7, %v1013_v22 }
0x15cc   :  { %1342 = shalt.err (!%p1339_p12)
}
0x15cd   :  { %s1343_s25 = scalar_lea.hbm %s1599_s5, 32 }
0x15ce   :  { %p1344_p13 = scmp.ne.s32.totalorder %s1599_s5, %s1343_s25  ;;  %p1347_p0 = scmp.lt.u32.totalorder %s1343_s25, %s1599_s5 }
0x15d0   :  { %p1349_p1 = pnand %p1347_p0, %p1344_p13 }
0x15d2   :  { %1352 = shalt.err (!%p1349_p1)
}
0x15d3   :  { %1026 = dma.vmem_to_hbm [thread:$0]  %s1024_s21, 32, %s1599_s5, [#allocation5]  }
0x15d4   :  { %1355 = dma.done.wait [#allocation5], 32  }
0x15d5   :  { %1356 = vsyncadd [#allocation5], 4294967264 }
0x15d6   :  { %1030 = vsyncpa [#allocation4], 1 }
0x15d7   :  { %1031 = vsyncpa [#allocation5], 1 }

</bundles_post_ra>
